<compile_context>
chip_gen: v7x
topology: tpu7x:2x2x1
jax: 0.10.0
libtpu: 0.0.40
codegen_flags: <defaults>
</compile_context>

<pallas_src>
import functools

import jax
import jax.numpy as jnp
from jax import lax
from jax.experimental import pallas as pl
from jax.experimental.pallas import tpu as pltpu


LANES = 128            # lane-dense slab width (one vreg lane tile)
_SUBLANES = 8


def _round_up(x, m):
    return ((x + m - 1) // m) * m


def _cdiv(a, b):
    return (a + b - 1) // b


# --------------------------------------------------------------------------
# Kernel
# --------------------------------------------------------------------------
def _combination_loss_kernel(pp_ref, tp_ref, pv_ref, tv_ref, o_ref, acc_ref, *,
                             scale_pos, scale_vel,
                             nb_pos, nb_vel, tail_pos, tail_vel):
    """Streaming fused MSE accumulation.

    Grid = (split, n_inner).  Axis 0 ("parallel") is the v7x 2-TC split; axis 1
    ("arbitrary") carries the f32 accumulator.  Global row-block index
    j = c * n_inner + i.  alpha/N and beta/N are pre-folded into scale_*.
    """
    c = pl.program_id(0)
    i = pl.program_id(1)
    n_inner = pl.num_programs(1)
    j = c * n_inner + i                      # global row-block index

    @pl.when(i == 0)
    def _init():
        acc_ref[...] = jnp.zeros_like(acc_ref)

    def _accumulate(a_ref, b_ref, scale, nb, tail_rows):
        tm = a_ref.shape[0]

        def _add(valid_rows):
            d = a_ref[...].astype(jnp.float32) - b_ref[...].astype(jnp.float32)
            contrib = (d * d) * scale        # pure VPU; scale = weight / N
            if valid_rows is not None:
                # Overhanging rows of the last block hold unspecified data.
                rid = lax.broadcasted_iota(jnp.int32, contrib.shape, 0)
                contrib = jnp.where(rid < valid_rows, contrib, 0.0)
            acc_ref[0:tm, :] += contrib      # shared accumulator (row slice)

        if tail_rows == tm:                  # every block of this pair is full
            @pl.when(j < nb)
            def _():
                _add(None)
        else:
            if nb > 1:
                @pl.when(j < nb - 1)
                def _():
                    _add(None)

            @pl.when(j == nb - 1)            # masked ragged tail block
            def _():
                _add(tail_rows)

    _accumulate(pp_ref, tp_ref, scale_pos, nb_pos, tail_pos)
    _accumulate(pv_ref, tv_ref, scale_vel, nb_vel, tail_vel)

    @pl.when(i == n_inner - 1)
    def _finalize():
        # One cross-lane/sublane reduction per core; splat into the per-core
        # partial-sum tile (wrapper reads element [c, 0, 0]).
        o_ref[...] = jnp.broadcast_to(jnp.sum(acc_ref[...]), o_ref.shape)


# --------------------------------------------------------------------------
# Wrapper
# --------------------------------------------------------------------------
def _to_slab(x):
    """Flatten to a lane-dense (rows, 128) view without copying when possible."""
    n = int(x.size)
    flat = x.reshape(-1)                     # free view of a contiguous array
    if n % LANES != 0 or n < _SUBLANES * LANES:
        # TODO(synk): a 1-D BlockSpec with in-kernel element masking would
        # remove this full-array pad; only hit for sizes not divisible by 128
        # or tiny forced inputs.
        padded = max(_round_up(n, _SUBLANES * LANES), _SUBLANES * LANES)
        flat = jnp.pad(flat, (0, padded - n))
        n = padded
    rows = n // LANES
    return flat.reshape(rows, LANES), rows


def _pick_tm(rows, itemsize, target_block_bytes):
    """Rows per block: ~target_block_bytes per stream, never exceeding rows."""
    target_rows = max(_SUBLANES,
                      (target_block_bytes // (LANES * itemsize))
                      // _SUBLANES * _SUBLANES)
    tm = min(target_rows, (rows // _SUBLANES) * _SUBLANES)
    return max(tm, _SUBLANES)


def combination_loss_ref(pred_pos, true_pos, pred_vel, true_vel,
                         alpha=0.75, beta=0.25):
    mse_pos = jnp.mean((pred_pos.astype(jnp.float32)
                        - true_pos.astype(jnp.float32)) ** 2)
    mse_vel = jnp.mean((pred_vel.astype(jnp.float32)
                        - true_vel.astype(jnp.float32)) ** 2)
    return alpha * mse_pos + beta * mse_vel


def combination_loss(pred_pos, true_pos, pred_vel, true_vel,
                     alpha=0.75, beta=0.25, *,
                     target_block_bytes=2 << 20,     # ~2 MiB per input stream
                     min_kernel_elems=65536,
                     force_kernel=False,
                     vmem_limit_bytes=48 << 20):
    """Pallas TPU implementation of CombinationLoss.forward."""
    assert pred_pos.shape == true_pos.shape
    assert pred_vel.shape == true_vel.shape

    n_pos = int(pred_pos.size)
    n_vel = int(pred_vel.size)

    # Small / empty inputs: plain XLA fusion beats the pallas_call fixed cost
    # (and matches torch's nan-on-empty behaviour for size-0 inputs).
    if (n_pos == 0 or n_vel == 0
            or (not force_kernel and n_pos + n_vel < min_kernel_elems)):
        return combination_loss_ref(pred_pos, true_pos, pred_vel, true_vel,
                                    alpha, beta)

    pp, rows_pos = _to_slab(pred_pos)
    tp, _ = _to_slab(true_pos)
    pv, rows_vel = _to_slab(pred_vel)
    tv, _ = _to_slab(true_vel)

    tm_pos = _pick_tm(rows_pos, pred_pos.dtype.itemsize, target_block_bytes)
    tm_vel = _pick_tm(rows_vel, pred_vel.dtype.itemsize, target_block_bytes)

    nb_pos = _cdiv(rows_pos, tm_pos)
    nb_vel = _cdiv(rows_vel, tm_vel)
    tail_pos = rows_pos - (nb_pos - 1) * tm_pos      # rows valid in last block
    tail_vel = rows_vel - (nb_vel - 1) * tm_vel

    nb_max = max(nb_pos, nb_vel)
    split = 2 if nb_max >= 2 else 1                  # v7x 2-TC; 1-TC harmless
    n_inner = _cdiv(nb_max, split)

    def _row_map(nb):
        last = nb - 1

        def idx(c, i):
            # Clamp to the pair's last valid block so Pallas never DMAs past
            # the array and stops re-fetching once this pair is exhausted.
            return (jnp.minimum(c * n_inner + i, last), 0)

        return idx

    spec_pos = pl.BlockSpec((tm_pos, LANES), _row_map(nb_pos))
    spec_vel = pl.BlockSpec((tm_vel, LANES), _row_map(nb_vel))

    kernel = functools.partial(
        _combination_loss_kernel,
        scale_pos=float(alpha) / n_pos,              # mean + weight folded in
        scale_vel=float(beta) / n_vel,
        nb_pos=nb_pos, nb_vel=nb_vel,
        tail_pos=tail_pos, tail_vel=tail_vel,
    )

    partials = pl.pallas_call(
        kernel,
        out_shape=jax.ShapeDtypeStruct((split, _SUBLANES, LANES), jnp.float32),
        grid_spec=pltpu.PrefetchScalarGridSpec(
            num_scalar_prefetch=0,
            grid=(split, n_inner),
            in_specs=[spec_pos, spec_pos, spec_vel, spec_vel],
            out_specs=pl.BlockSpec((1, _SUBLANES, LANES),
                                   lambda c, i: (c, 0, 0)),
            scratch_shapes=[
                pltpu.VMEM((max(tm_pos, tm_vel), LANES), jnp.float32)],
        ),
        compiler_params=pltpu.CompilerParams(
            dimension_semantics=("parallel", "arbitrary"),
            vmem_limit_bytes=vmem_limit_bytes),
    )(pp, tp, pv, tv)

    # One partial per TensorCore; each core splatted its scalar into its tile.
    return jnp.sum(partials[:, 0, 0])


# --------------------------------------------------------------------------
# Demo / self-test
# --------------------------------------------------------------------------
if __name__ == "__main__":
    key = jax.random.PRNGKey(0)
    k1, k2, k3, k4, k5, k6, k7, k8 = jax.random.split(key, 8)

    # Module-consistent small shapes: batch=2, seq=8, feature dim=32.
    B, S, D = 2, 8, 32
    pred_pos = jax.random.normal(k1, (B, S, D), dtype=jnp.float32)
    true_pos = jax.random.normal(k2, (B, S, D), dtype=jnp.float32)
    pred_vel = jax.random.normal(k3, (B, S, D), dtype=jnp.float32)
    true_vel = jax.random.normal(k4, (B, S, D), dtype=jnp.float32)
    ref = combination_loss_ref(pred_pos, true_pos, pred_vel, true_vel)

    # 1) Default call on a tiny input -> small-input fast path.
    out1 = jax.block_until_ready(
        combination_loss(pred_pos, true_pos, pred_vel, true_vel))
    assert jnp.allclose(out1, ref, rtol=3e-5, atol=1e-6), (out1, ref)

    # 2) Force the Pallas kernel on the tiny input (pad fallback, single block,
    #    grid (1, 1)).
    out2 = jax.block_until_ready(
        combination_loss(pred_pos, true_pos, pred_vel, true_vel,
                         force_kernel=True))
    assert jnp.allclose(out2, ref, rtol=3e-5, atol=1e-6), (out2, ref)

    # 3) Mismatched pos/vel sizes, small blocks -> multi-block grid (2, 4),
    #    2-TC split axis, clamped/gated vel stream, masked ragged tails on
    #    both pairs, no wrapper pad (sizes are 128-multiples).
    pp3 = jax.random.normal(k5, (24, 68, 32), dtype=jnp.float32)   # 52224 elems
    tp3 = jax.random.normal(k6, (24, 68, 32), dtype=jnp.float32)
    pv3 = jax.random.normal(k7, (24, 68, 8), dtype=jnp.float32)    # 13056 elems
    tv3 = jax.random.normal(k8, (24, 68, 8), dtype=jnp.float32)
    out3 = jax.block_until_ready(
        combination_loss(pp3, tp3, pv3, tv3,
                         target_block_bytes=32 << 10, force_kernel=True))
    ref3 = combination_loss_ref(pp3, tp3, pv3, tv3)
    assert jnp.allclose(out3, ref3, rtol=3e-5, atol=1e-6), (out3, ref3)

    # 4) Default-parameter kernel path (>= 64K elements, no pad, no masking).
    kk = jax.random.split(k8, 4)
    pp4 = jax.random.normal(kk[0], (32, 64, 64), dtype=jnp.float32)
    tp4 = jax.random.normal(kk[1], (32, 64, 64), dtype=jnp.float32)
    pv4 = jax.random.normal(kk[2], (32, 64, 64), dtype=jnp.float32)
    tv4 = jax.random.normal(kk[3], (32, 64, 64), dtype=jnp.float32)
    out4 = jax.block_until_ready(combination_loss(pp4, tp4, pv4, tv4))
    ref4 = combination_loss_ref(pp4, tp4, pv4, tv4)
    assert jnp.allclose(out4, ref4, rtol=3e-5, atol=1e-6), (out4, ref4)

    print("KERNEL_OK")
</pallas_src>

<mosaic_0001>
module attributes {stable_mosaic.version = 11 : i64} {
  func.func @_combination_loss_kernel(%arg0: i32, %arg1: i32, %arg2: memref<8x128xf32, #tpu.memory_space<vmem>>, %arg3: memref<8x128xf32, #tpu.memory_space<vmem>>, %arg4: memref<8x128xf32, #tpu.memory_space<vmem>>, %arg5: memref<8x128xf32, #tpu.memory_space<vmem>>, %arg6: memref<1x8x128xf32, #tpu.memory_space<vmem>>, %arg7: memref<8x128xf32, #tpu.memory_space<vmem>>) attributes {dimension_semantics = [#tpu.dimension_semantics<parallel>, #tpu.dimension_semantics<arbitrary>], iteration_bounds = array<i64: 1, 1>, scalar_prefetch = 0 : i64, scratch_operands = 1 : i64, tpu.core_type = #tpu.core_type<tc>, window_params = [{transform_indices = @transform_0, window_bounds = array<i64: 8, 128>}, {transform_indices = @transform_1, window_bounds = array<i64: 8, 128>}, {transform_indices = @transform_2, window_bounds = array<i64: 8, 128>}, {transform_indices = @transform_3, window_bounds = array<i64: 8, 128>}, {transform_indices = @transform_4, window_bounds = array<i64: 1, 8, 128>}]} {
    %c1_i32 = arith.constant 1 : i32
    %0 = arith.muli %arg0, %c1_i32 : i32
    %1 = arith.addi %0, %arg1 : i32
    %c0_i32 = arith.constant 0 : i32
    %2 = arith.cmpi eq, %arg1, %c0_i32 : i32
    %3 = arith.extui %2 : i1 to i32
    %c0_i32_0 = arith.constant 0 : i32
    %4 = arith.cmpi ne, %3, %c0_i32_0 : i32
    scf.if %4 {
      %cst = arith.constant 0.000000e+00 : f32
      %14 = vector.broadcast %cst : f32 to vector<8x128xf32>
      %c0 = arith.constant 0 : index
      %c0_7 = arith.constant 0 : index
      %15 = vector.load %arg7[%c0, %c0_7] : memref<8x128xf32, #tpu.memory_space<vmem>>, vector<8x128xf32>
      tpu.vector_store %arg7[%c0, %c0_7], %14 {strides = array<i32>} : memref<8x128xf32, #tpu.memory_space<vmem>>, vector<8x128xf32>,
    } else {
    }
    %c1_i32_1 = arith.constant 1 : i32
    %5 = arith.cmpi slt, %1, %c1_i32_1 : i32
    %6 = arith.extui %5 : i1 to i32
    %c0_i32_2 = arith.constant 0 : i32
    %7 = arith.cmpi ne, %6, %c0_i32_2 : i32
    scf.if %7 {
      %c0 = arith.constant 0 : index
      %c0_7 = arith.constant 0 : index
      %14 = vector.load %arg2[%c0, %c0_7] : memref<8x128xf32, #tpu.memory_space<vmem>>, vector<8x128xf32>
      %c0_8 = arith.constant 0 : index
      %c0_9 = arith.constant 0 : index
      %15 = vector.load %arg3[%c0_8, %c0_9] : memref<8x128xf32, #tpu.memory_space<vmem>>, vector<8x128xf32>
      %16 = arith.subf %14, %15 : vector<8x128xf32>
      %17 = arith.mulf %16, %16 : vector<8x128xf32>
      %cst = arith.constant 0.00146484375 : f32
      %18 = vector.broadcast %cst : f32 to vector<8x128xf32>
      %19 = arith.mulf %17, %18 : vector<8x128xf32>
      %c0_10 = arith.constant 0 : index
      %c0_11 = arith.constant 0 : index
      %20 = vector.load %arg7[%c0_10, %c0_11] : memref<8x128xf32, #tpu.memory_space<vmem>>, vector<8x128xf32>
      %21 = arith.addf %20, %19 : vector<8x128xf32>
      %c0_12 = arith.constant 0 : index
      %c0_13 = arith.constant 0 : index
      %22 = vector.load %arg7[%c0_12, %c0_13] : memref<8x128xf32, #tpu.memory_space<vmem>>, vector<8x128xf32>
      tpu.vector_store %arg7[%c0_12, %c0_13], %21 {strides = array<i32>} : memref<8x128xf32, #tpu.memory_space<vmem>>, vector<8x128xf32>,
    } else {
    }
    %c1_i32_3 = arith.constant 1 : i32
    %8 = arith.cmpi slt, %1, %c1_i32_3 : i32
    %9 = arith.extui %8 : i1 to i32
    %c0_i32_4 = arith.constant 0 : i32
    %10 = arith.cmpi ne, %9, %c0_i32_4 : i32
    scf.if %10 {
      %c0 = arith.constant 0 : index
      %c0_7 = arith.constant 0 : index
      %14 = vector.load %arg4[%c0, %c0_7] : memref<8x128xf32, #tpu.memory_space<vmem>>, vector<8x128xf32>
      %c0_8 = arith.constant 0 : index
      %c0_9 = arith.constant 0 : index
      %15 = vector.load %arg5[%c0_8, %c0_9] : memref<8x128xf32, #tpu.memory_space<vmem>>, vector<8x128xf32>
      %16 = arith.subf %14, %15 : vector<8x128xf32>
      %17 = arith.mulf %16, %16 : vector<8x128xf32>
      %cst = arith.constant 4.8828125E-4 : f32
      %18 = vector.broadcast %cst : f32 to vector<8x128xf32>
      %19 = arith.mulf %17, %18 : vector<8x128xf32>
      %c0_10 = arith.constant 0 : index
      %c0_11 = arith.constant 0 : index
      %20 = vector.load %arg7[%c0_10, %c0_11] : memref<8x128xf32, #tpu.memory_space<vmem>>, vector<8x128xf32>
      %21 = arith.addf %20, %19 : vector<8x128xf32>
      %c0_12 = arith.constant 0 : index
      %c0_13 = arith.constant 0 : index
      %22 = vector.load %arg7[%c0_12, %c0_13] : memref<8x128xf32, #tpu.memory_space<vmem>>, vector<8x128xf32>
      tpu.vector_store %arg7[%c0_12, %c0_13], %21 {strides = array<i32>} : memref<8x128xf32, #tpu.memory_space<vmem>>, vector<8x128xf32>,
    } else {
    }
    %c0_i32_5 = arith.constant 0 : i32
    %11 = arith.cmpi eq, %arg1, %c0_i32_5 : i32
    %12 = arith.extui %11 : i1 to i32
    %c0_i32_6 = arith.constant 0 : i32
    %13 = arith.cmpi ne, %12, %c0_i32_6 : i32
    scf.if %13 {
      %c0 = arith.constant 0 : index
      %c0_7 = arith.constant 0 : index
      %14 = vector.load %arg7[%c0, %c0_7] : memref<8x128xf32, #tpu.memory_space<vmem>>, vector<8x128xf32>
      %15 = vector.shape_cast %14 : vector<8x128xf32> to vector<1x8x128xf32>
      %cst = arith.constant dense<0.000000e+00> : vector<1xf32>
      %16 = vector.multi_reduction <add>, %15, %cst [1, 2] : vector<1x8x128xf32> to vector<1xf32>
      %17 = vector.shape_cast %16 : vector<1xf32> to vector<1x1x1xf32>
      %18 = vector.extract %17[0, 0, 0] : f32 from vector<1x1x1xf32>
      %19 = vector.broadcast %18 : f32 to vector<1x8x128xf32>
      %c0_8 = arith.constant 0 : index
      %c0_9 = arith.constant 0 : index
      %c0_10 = arith.constant 0 : index
      %20 = vector.load %arg6[%c0_8, %c0_9, %c0_10] : memref<1x8x128xf32, #tpu.memory_space<vmem>>, vector<1x8x128xf32>
      tpu.vector_store %arg6[%c0_8, %c0_9, %c0_10], %19 {strides = array<i32>} : memref<1x8x128xf32, #tpu.memory_space<vmem>>, vector<1x8x128xf32>,
    } else {
    }
    return
  }
  func.func @transform_0(%arg0: i32, %arg1: i32) -> (i32, i32) {
    %c1_i32 = arith.constant 1 : i32
    %0 = arith.muli %arg0, %c1_i32 : i32
    %1 = arith.addi %0, %arg1 : i32
    %c0_i32 = arith.constant 0 : i32
    %2 = arith.minsi %1, %c0_i32 : i32
    %c0_i32_0 = arith.constant 0 : i32
    %c0_i32_1 = arith.constant 0 : i32
    return %2, %c0_i32_0 : i32, i32
  }
  func.func @transform_1(%arg0: i32, %arg1: i32) -> (i32, i32) {
    %c1_i32 = arith.constant 1 : i32
    %0 = arith.muli %arg0, %c1_i32 : i32
    %1 = arith.addi %0, %arg1 : i32
    %c0_i32 = arith.constant 0 : i32
    %2 = arith.minsi %1, %c0_i32 : i32
    %c0_i32_0 = arith.constant 0 : i32
    %c0_i32_1 = arith.constant 0 : i32
    return %2, %c0_i32_0 : i32, i32
  }
  func.func @transform_2(%arg0: i32, %arg1: i32) -> (i32, i32) {
    %c1_i32 = arith.constant 1 : i32
    %0 = arith.muli %arg0, %c1_i32 : i32
    %1 = arith.addi %0, %arg1 : i32
    %c0_i32 = arith.constant 0 : i32
    %2 = arith.minsi %1, %c0_i32 : i32
    %c0_i32_0 = arith.constant 0 : i32
    %c0_i32_1 = arith.constant 0 : i32
    return %2, %c0_i32_0 : i32, i32
  }
  func.func @transform_3(%arg0: i32, %arg1: i32) -> (i32, i32) {
    %c1_i32 = arith.constant 1 : i32
    %0 = arith.muli %arg0, %c1_i32 : i32
    %1 = arith.addi %0, %arg1 : i32
    %c0_i32 = arith.constant 0 : i32
    %2 = arith.minsi %1, %c0_i32 : i32
    %c0_i32_0 = arith.constant 0 : i32
    %c0_i32_1 = arith.constant 0 : i32
    return %2, %c0_i32_0 : i32, i32
  }
  func.func @transform_4(%arg0: i32, %arg1: i32) -> (i32, i32, i32) {
    %c0_i32 = arith.constant 0 : i32
    %c0_i32_0 = arith.constant 0 : i32
    %c0_i32_1 = arith.constant 0 : i32
    return %arg0, %c0_i32, %c0_i32_0 : i32, i32, i32
  }
}

</mosaic_0001>

<bundles_post_ra>
// kernel: tpu_custom_call.1
= control target key start
LH: loop header
LB: loop body
LE: loop exit
PB: predicated region body
PF: predicated region fallthrough
CT: control target
= control target key end

     0   :  { %9 = vsyncpa [#allocation4], 0  ;;  %s353_s0 = inlined_call_operand.hbm [shape: f32[8,128], index: 0, kind: input, shape index: {}]   ;;  %s354_s1 = inlined_call_operand.hbm [shape: f32[8,128], index: 1, kind: input, shape index: {}]   ;;  %s355_s2 = inlined_call_operand.hbm [shape: f32[8,128], index: 2, kind: input, shape index: {}]   ;;  %s356_s3 = inlined_call_operand.vmem [shape: f32[8,128], index: 3, kind: input, shape index: {}]   ;;  %s357_s4 = inlined_call_operand.hbm [shape: f32[1,8,128], index: 4, kind: output, shape index: {}]  }
   0x1   :  { %10 = vsyncpa [#allocation7], 0 }
   0x2   :  { %11 = vsyncpa [#allocation5], 0  ;;  %s273_s15 = smov [#allocation6]   ;;  %s274_s17 = smov [#allocation3]  }
   0x3   :  { %s38_s16 = sshll.u32 %s273_s15, 4  ;;  %s23_s18 = sshll.u32 %s274_s17, 4  ;;  %s39_s16 = int_to_ptr.vmem [resolvable:$true] %s38_s16  ;;  %s24_s18 = int_to_ptr.vmem [resolvable:$true] %s23_s18 }
   0x4   :  { %s179_s21 = scalar_lea.hbm %s354_s1, 128 }
   0x5   :  { %p180_p0 = scmp.ne.s32.totalorder %s354_s1, %s179_s21  ;;  %p183_p1 = scmp.lt.u32.totalorder %s179_s21, %s354_s1 }
   0x7   :  { %p185_p2 = pnand %p183_p1, %p180_p0 }
   0x9   :  { %188 = shalt.err (!%p185_p2)
}
   0xa   :  { %s189_s26 = scalar_lea.vmem %s39_s16, 128  ;;  %p194_p4 = scmp.lt.s32.totalorder %s39_s16, %s39_s16 }
   0xb   :  { %p190_p3 = scmp.ne.s32.totalorder %s39_s16, %s189_s26  ;;  %p195_p5 = scmp.lt.s32.totalorder %s189_s26, %s189_s26 }
   0xd   :  { %p196_p6 = por %p195_p5, %p194_p4 }
   0xf   :  { %p197_p7 = pnand %p196_p6, %p190_p3 }
  0x11   :  { %200 = shalt.err (!%p197_p7)
}
  0x12   :  { %41 = dma.hbm_to_vmem [thread:$0]  %s354_s1, 128, %s39_s16, [#allocation7]  }
  0x13   :  { %s201_s5 = scalar_lea.hbm %s353_s0, 128 }
  0x14   :  { %p202_p8 = scmp.ne.s32.totalorder %s353_s0, %s201_s5  ;;  %p205_p9 = scmp.lt.u32.totalorder %s201_s5, %s353_s0 }
  0x16   :  { %p207_p10 = pnand %p205_p9, %p202_p8 }
  0x18   :  { %210 = shalt.err (!%p207_p10)
}
  0x19   :  { %s211_s10 = scalar_lea.vmem %s24_s18, 128  ;;  %p216_p12 = scmp.lt.s32.totalorder %s24_s18, %s24_s18 }
  0x1a   :  { %p212_p11 = scmp.ne.s32.totalorder %s24_s18, %s211_s10  ;;  %p217_p13 = scmp.lt.s32.totalorder %s211_s10, %s211_s10 }
  0x1c   :  { %p218_p0 = por %p217_p13, %p216_p12 }
  0x1e   :  { %p219_p1 = pnand %p218_p0, %p212_p11 }
  0x20   :  { %222 = shalt.err (!%p219_p1)
}
  0x21   :  { %26 = dma.hbm_to_vmem [thread:$0]  %s353_s0, 128, %s24_s18, [#allocation4]  }
  0x22   :  { %s275_s12 = smov [#allocation8]   ;;  %s223_s16 = scalar_lea.hbm %s355_s2, 128 }
  0x23   :  { %s53_s13 = sshll.u32 %s275_s12, 4  ;;  %p224_p2 = scmp.ne.s32.totalorder %s355_s2, %s223_s16  ;;  %s54_s13 = int_to_ptr.vmem [resolvable:$true] %s53_s13 }
  0x24   :  { %p227_p3 = scmp.lt.u32.totalorder %s223_s16, %s355_s2 }
  0x26   :  { %p229_p4 = pnand %p227_p3, %p224_p2 }
  0x28   :  { %232 = shalt.err (!%p229_p4)
}
  0x29   :  { %s233_s22 = scalar_lea.vmem %s54_s13, 128  ;;  %p238_p6 = scmp.lt.s32.totalorder %s54_s13, %s54_s13 }
  0x2a   :  { %p234_p5 = scmp.ne.s32.totalorder %s54_s13, %s233_s22  ;;  %p239_p7 = scmp.lt.s32.totalorder %s233_s22, %s233_s22 }
  0x2c   :  { %p240_p8 = por %p239_p7, %p238_p6 }
  0x2e   :  { %p241_p9 = pnand %p240_p8, %p234_p5 }
  0x30   :  { %244 = shalt.err (!%p241_p9)
}
  0x31   :  { %56 = dma.hbm_to_vmem [thread:$0]  %s355_s2, 128, %s54_s13, [#allocation7]  }
  0x32   :  { %267 = dma.done.wait [#allocation4], 128  }
  0x33   :  { %268 = vsyncadd [#allocation4], 4294967168 }
  0x34   :  { %269 = dma.done.wait [#allocation7], 256  }
  0x35   :  { %270 = vsyncadd [#allocation7], 4294967040  ;;  %v114_v0 = vld [vmem:[#allocation3] sm:$0xff]  ;;  %v115_v1 = vld [vmem:[#allocation6] sm:$0xff]  ;;  %s276_s2 = smov [#allocation9]  }
  0x36   :  { %v122_v2 = vld [vmem:[#allocation8] sm:$0xff]  ;;  %v116_v3 = vsub.f32 %v114_v0, %v115_v1  ;;  %v123_v4 = vld [vmem:[%s356_s3] sm:$0xff]  ;;  %s151_s25 = sshll.u32 %s276_s2, 4  ;;  %s152_s25 = int_to_ptr.vmem [resolvable:$true] %s151_s25 }
  0x37   :  { %v124_v5 = vsub.f32 %v122_v2, %v123_v4  ;;  %s245_s3 = scalar_lea.vmem %s152_s25, 128  ;;  %p250_p11 = scmp.lt.s32.totalorder %s152_s25, %s152_s25 }
  0x38   :  { %v117_v6 = vmul.f32 %v116_v3, %v116_v3  ;;  %p246_p10 = scmp.ne.s32.totalorder %s152_s25, %s245_s3  ;;  %p251_p12 = scmp.lt.s32.totalorder %s245_s3, %s245_s3 }
  0x39   :  { %v125_v7 = vmul.f32 %v124_v5, %v124_v5 }
  0x3a   :  { %v118_v8 = vmul.f32 0.0014648438, %v117_v6  ;;  %p252_p13 = por %p251_p12, %p250_p11 }
  0x3b   :  { %v126_v9 = vmul.f32 0.00048828125, %v125_v7 }
  0x3c   :  { %p253_p0 = pnand %p252_p13, %p246_p10 }
  0x3d   :  { %v128_v10 = vadd.f32 %v126_v9, %v118_v8 }
  0x3f   :  { %134 = vadd.xlane.f32.xlu0 %v128_v10 }
  0xcc   :  { %v135_v11 = vpop.xlane.xlu0 %134 }
  0xcd   :  { %v136_v12 = vrot.slane %v135_v11, 4 }
  0xcf   :  { %v137_v13 = vadd.f32 %v136_v12, %v135_v11 }
  0xd1   :  { %v138_v14 = vrot.slane %v137_v13, 2 }
  0xd3   :  { %v139_v15 = vadd.f32 %v138_v14, %v137_v13 }
  0xd5   :  { %v140_v16 = vrot.slane %v139_v15, 1 }
  0xd7   :  { %v141_v17 = vadd.f32 %v140_v16, %v139_v15 }
  0xd9   :  { %173 = vpush %v141_v17 }
 0x10a   :  { %s174_s26 = spop %173 }
 0x10b   :  { %v143_v18 = vstv %s174_s26 }
 0x10c   :  { %144 = vst [vmem:[#allocation9] sm:$0xff] %v143_v18 }
 0x10d   :  { %256 = shalt.err (!%p253_p0)
}
 0x10e   :  { %s257_s29 = scalar_lea.hbm %s357_s4, 128 }
 0x10f   :  { %p258_p1 = scmp.ne.s32.totalorder %s357_s4, %s257_s29  ;;  %p261_p2 = scmp.lt.u32.totalorder %s257_s29, %s357_s4 }
 0x111   :  { %p263_p3 = pnand %p261_p2, %p258_p1 }
 0x113   :  { %266 = shalt.err (!%p263_p3)
}
 0x114   :  { %154 = dma.vmem_to_hbm [thread:$0]  %s152_s25, 128, %s357_s4, [#allocation5]  }
 0x115   :  { %271 = dma.done.wait [#allocation5], 128  }
 0x116   :  { %272 = vsyncadd [#allocation5], 4294967168 }
 0x117   :  { %158 = vsyncpa [#allocation4], 1 }
 0x118   :  { %159 = vsyncpa [#allocation7], 1 }
 0x119   :  { %160 = vsyncpa [#allocation5], 1 }

</bundles_post_ra>
